<compile_context>
chip_gen: v7x
topology: tpu7x:2x2x1
jax: 0.10.0
libtpu: 0.0.40
codegen_flags: <defaults>
</compile_context>

<pallas_src>
import jax
import jax.numpy as jnp
from jax.experimental import pallas as pl
from jax.experimental.pallas import tpu as pltpu

LANE = 128                      # vreg lane width (last-dim granularity)
MIN_TB = 16                     # batch-tile granularity (bf16 sublane packing of h)
VMEM_BUDGET = 40 * 1024 * 1024  # conservative across v5e/v6e (128 MiB) and v7x (64 MiB)

# Constant-index weight/bias operands only need one buffer; fall back to the
# default pipelining if pl.Buffered(1) is rejected by this jax version.
_WEIGHT_MODE = [pl.Buffered(1)]


def _round_up(n, m):
    return ((n + m - 1) // m) * m


def _softplus_f32(z):
    # torch.nn.Softplus (beta=1, threshold=20): log1p(exp(z)) for z <= 20 else z.
    e = jnp.exp(jnp.minimum(z, 20.0))
    return jnp.where(z > 20.0, z, jnp.log1p(e))


def _body(x_ref, wb_ref, bb_ref, wrc_ref, brc_ref):
    # backbone: h = relu(x @ Wb + bb); bf16 operands, f32 accumulate/elementwise.
    h = jnp.dot(x_ref[...].astype(wb_ref.dtype), wb_ref[...],
                preferred_element_type=jnp.float32)
    h = jnp.maximum(h + bb_ref[...], 0.0)
    # fused heads: z = h @ [Wr | Wc] + [br | bc]
    z = jnp.dot(h.astype(wrc_ref.dtype), wrc_ref[...],
                preferred_element_type=jnp.float32) + brc_ref[...]
    return _softplus_f32(z)


def _fused_slab_kernel(x_ref, wb_ref, bb_ref, wrc_ref, brc_ref, out_ref):
    out_ref[...] = _body(x_ref, wb_ref, bb_ref, wrc_ref, brc_ref).astype(out_ref.dtype)


def _split_heads_kernel(x_ref, wb_ref, bb_ref, wrc_ref, brc_ref, rate_ref, conc_ref):
    sp = _body(x_ref, wb_ref, bb_ref, wrc_ref, brc_ref)
    d = rate_ref.shape[-1]                     # lane-aligned split -> no data movement
    rate_ref[...] = sp[:, :d].astype(rate_ref.dtype)
    conc_ref[...] = sp[:, d:].astype(conc_ref.dtype)


def pack_params(raw, *, param_dtype=jnp.bfloat16):
    """Fuse rate/conc heads into one wide weight; pad only where required."""
    wb, bb, wr, br, wc, bc = raw
    d_in, hidden = wb.shape
    d_out = wr.shape[1]

    hp = _round_up(hidden, LANE)
    split = (d_out % LANE == 0)                # lane-dense per-head outputs possible
    w_cols = 2 * d_out if split else _round_up(2 * d_out, LANE)

    wb_p = jnp.zeros((d_in, hp), param_dtype).at[:, :hidden].set(wb.astype(param_dtype))
    bb_p = jnp.zeros((1, hp), jnp.float32).at[:, :hidden].set(bb.astype(jnp.float32))

    wrc_p = jnp.zeros((hp, w_cols), param_dtype)
    wrc_p = wrc_p.at[:hidden, :d_out].set(wr.astype(param_dtype))
    wrc_p = wrc_p.at[:hidden, d_out:2 * d_out].set(wc.astype(param_dtype))
    brc_p = jnp.zeros((1, w_cols), jnp.float32)
    brc_p = brc_p.at[:, :d_out].set(br.astype(jnp.float32))
    brc_p = brc_p.at[:, d_out:2 * d_out].set(bc.astype(jnp.float32))

    return dict(wb=wb_p, bb=bb_p, wrc=wrc_p, brc=brc_p,
                d_in=d_in, d_out=d_out, split=split)


def deep_indep_gamma_forward(x, params, *, block_b=512, out_dtype=jnp.float32):
    """Returns (rate, conc), each [B, D_out] in out_dtype."""
    wb, bb, wrc, brc = params["wb"], params["bb"], params["wrc"], params["brc"]
    d_in, d_out, split = params["d_in"], params["d_out"], params["split"]

    B = x.shape[0]
    hp = wb.shape[1]
    w_cols = wrc.shape[1]
    x_isz = jnp.dtype(x.dtype).itemsize
    o_isz = jnp.dtype(out_dtype).itemsize

    # --- batch tile: balanced, >=2 tiles for v7x's two TCs, VMEM-budgeted --------
    w_bytes = int(wb.size) * wb.dtype.itemsize + int(wrc.size) * wrc.dtype.itemsize
    b_bytes = (int(bb.size) + int(brc.size)) * 4
    per_row = (2 * d_in * x_isz        # x tile, double-buffered
               + 2 * w_cols * o_isz    # output tile(s), double-buffered
               + hp * 6                # h (f32) + bf16 copy fed to second matmul
               + w_cols * 8)           # z + softplus temporaries (f32)
    avail = max(VMEM_BUDGET - 2 * w_bytes - 2 * b_bytes, MIN_TB * per_row)
    tb_cap = max(MIN_TB, (min(block_b, avail // per_row) // MIN_TB) * MIN_TB)
    n_tiles = pl.cdiv(B, tb_cap)
    if B >= 2 * MIN_TB:
        n_tiles = max(n_tiles, 2)      # keep both v7x TensorCores busy
    tb = _round_up(pl.cdiv(B, n_tiles), MIN_TB)
    bp = _round_up(B, tb)
    grid = (bp // tb,)

    # Only a (small) batch pad; no feature pad, no wrapper-side dtype cast.
    xp = x if bp == B else jnp.pad(x, ((0, bp - B), (0, 0)))

    # --- scheduling hints ---------------------------------------------------------
    est_vmem = 2 * w_bytes + 2 * b_bytes + tb * per_row          # worst case (2 wbufs)
    vmem_limit = int(min(max(int(est_vmem * 1.4) + (4 << 20), 32 << 20), 60 << 20))
    cost = pl.CostEstimate(
        flops=int(2 * bp * (d_in * hp + hp * w_cols)),
        transcendentals=int(2 * bp * w_cols),
        bytes_accessed=int(xp.size * x_isz + w_bytes + b_bytes + bp * w_cols * o_isz),
    )

    def run(weight_mode):
        def const_spec(shape):
            if weight_mode is None:
                return pl.BlockSpec(shape, lambda i: (0, 0))
            return pl.BlockSpec(shape, lambda i: (0, 0), pipeline_mode=weight_mode)

        in_specs = [
            pl.BlockSpec((tb, d_in), lambda i: (i, 0)),   # x tile (pipelined)
            const_spec(wb.shape),                         # Wb      (VMEM-resident)
            const_spec(bb.shape),                         # bb
            const_spec(wrc.shape),                        # [Wr|Wc] (VMEM-resident)
            const_spec(brc.shape),                        # [br|bc]
        ]
        if split:
            kernel = _split_heads_kernel
            out_shape = (jax.ShapeDtypeStruct((bp, d_out), out_dtype),
                         jax.ShapeDtypeStruct((bp, d_out), out_dtype))
            out_specs = (pl.BlockSpec((tb, d_out), lambda i: (i, 0)),
                         pl.BlockSpec((tb, d_out), lambda i: (i, 0)))
        else:
            kernel = _fused_slab_kernel
            out_shape = jax.ShapeDtypeStruct((bp, w_cols), out_dtype)
            out_specs = pl.BlockSpec((tb, w_cols), lambda i: (i, 0))

        return pl.pallas_call(
            kernel,
            out_shape=out_shape,
            grid=grid,
            in_specs=in_specs,
            out_specs=out_specs,
            cost_estimate=cost,
            compiler_params=pltpu.CompilerParams(
                dimension_semantics=("parallel",),       # independent batch tiles
                vmem_limit_bytes=vmem_limit,
            ),
        )(xp, wb, bb, wrc, brc)

    try:
        out = run(_WEIGHT_MODE[0])
    except Exception:
        if _WEIGHT_MODE[0] is None:
            raise
        _WEIGHT_MODE[0] = None        # pl.Buffered(1) unsupported -> default buffering
        out = run(None)

    if split:
        rate_p, conc_p = out
        rate = rate_p if bp == B else rate_p[:B]
        conc = conc_p if bp == B else conc_p[:B]
    else:
        slab = out
        rate = slab[:B, :d_out]
        conc = slab[:B, d_out:2 * d_out]
    return rate, conc


def init_raw_params(key, d_in, hidden, d_out):
    ks = jax.random.split(key, 6)
    sb = 1.0 / jnp.sqrt(d_in)
    sh = 1.0 / jnp.sqrt(hidden)
    wb = jax.random.normal(ks[0], (d_in, hidden), jnp.float32) * sb
    bb = jax.random.normal(ks[1], (1, hidden), jnp.float32) * 0.1
    wr = jax.random.normal(ks[2], (hidden, d_out), jnp.float32) * sh
    br = jax.random.normal(ks[3], (1, d_out), jnp.float32) * 0.1
    wc = jax.random.normal(ks[4], (hidden, d_out), jnp.float32) * sh
    bc = jax.random.normal(ks[5], (1, d_out), jnp.float32) * 0.1
    return (wb, bb, wr, br, wc, bc)


def reference_forward(x, raw, *, cast_dtype=jnp.bfloat16):
    """Pure-JAX reference with the same bf16-operand / f32-accumulate numerics."""
    wb, bb, wr, br, wc, bc = raw
    xd = x.astype(cast_dtype)
    h = jnp.dot(xd, wb.astype(cast_dtype), preferred_element_type=jnp.float32) + bb
    h = jnp.maximum(h, 0.0)
    hd = h.astype(cast_dtype)
    sp = lambda z: jnp.where(z > 20.0, z, jnp.log1p(jnp.exp(jnp.minimum(z, 20.0))))
    zr = jnp.dot(hd, wr.astype(cast_dtype), preferred_element_type=jnp.float32) + br
    zc = jnp.dot(hd, wc.astype(cast_dtype), preferred_element_type=jnp.float32) + bc
    return sp(zr), sp(zc)


if __name__ == "__main__":
    key = jax.random.PRNGKey(0)
    kx, kp, k3 = jax.random.split(key, 3)

    # --- Case 1: small, non-lane-aligned head -> fused-slab output path ----------
    B, D_in, H, D_out = 8, 32, 32, 16
    x = jax.random.normal(kx, (B, D_in), jnp.float32)
    raw = init_raw_params(kp, D_in, H, D_out)
    params = pack_params(raw)

    rate, conc = deep_indep_gamma_forward(x, params)
    jax.block_until_ready((rate, conc))
    rate_ref, conc_ref = reference_forward(x, raw)
    assert rate.shape == (B, D_out) and conc.shape == (B, D_out)
    assert jnp.allclose(rate, rate_ref, atol=1e-2, rtol=1e-2)
    assert jnp.allclose(conc, conc_ref, atol=1e-2, rtol=1e-2)
    assert bool(jnp.all(rate > 0)) and bool(jnp.all(conc > 0))

    # --- Case 2: larger batch -> multi-tile pipelined path + padded last tile ----
    B2 = 300
    x2 = jax.random.normal(jax.random.PRNGKey(1), (B2, D_in), jnp.float32)
    rate2, conc2 = deep_indep_gamma_forward(x2, params)
    jax.block_until_ready((rate2, conc2))
    r2_ref, c2_ref = reference_forward(x2, raw)
    assert rate2.shape == (B2, D_out) and conc2.shape == (B2, D_out)
    assert jnp.allclose(rate2, r2_ref, atol=1e-2, rtol=1e-2)
    assert jnp.allclose(conc2, c2_ref, atol=1e-2, rtol=1e-2)
    assert bool(jnp.all(rate2 > 0)) and bool(jnp.all(conc2 > 0))

    # --- Case 3: lane-aligned head dim -> split (two lane-dense outputs) path ----
    B3, D_in3, H3, D_out3 = 48, 64, 128, 128
    raw3 = init_raw_params(k3, D_in3, H3, D_out3)
    params3 = pack_params(raw3)
    x3 = jax.random.normal(jax.random.PRNGKey(2), (B3, D_in3), jnp.float32)
    rate3, conc3 = deep_indep_gamma_forward(x3, params3)
    jax.block_until_ready((rate3, conc3))
    r3_ref, c3_ref = reference_forward(x3, raw3)
    assert rate3.shape == (B3, D_out3) and conc3.shape == (B3, D_out3)
    assert jnp.allclose(rate3, r3_ref, atol=1e-2, rtol=1e-2)
    assert jnp.allclose(conc3, c3_ref, atol=1e-2, rtol=1e-2)
    assert bool(jnp.all(rate3 > 0)) and bool(jnp.all(conc3 > 0))

    print("KERNEL_OK")
</pallas_src>

<mosaic_0001>
module attributes {stable_mosaic.version = 11 : i64} {
  func.func @_fused_slab_kernel(%arg0: i32, %arg1: memref<16x32xf32, #tpu.memory_space<vmem>>, %arg2: memref<32x128xbf16, #tpu.memory_space<vmem>>, %arg3: memref<1x128xf32, #tpu.memory_space<vmem>>, %arg4: memref<128x128xbf16, #tpu.memory_space<vmem>>, %arg5: memref<1x128xf32, #tpu.memory_space<vmem>>, %arg6: memref<16x128xf32, #tpu.memory_space<vmem>>) attributes {dimension_semantics = [#tpu.dimension_semantics<parallel>], iteration_bounds = array<i64: 1>, scalar_prefetch = 0 : i64, scratch_operands = 0 : i64, tpu.core_type = #tpu.core_type<tc>, window_params = [{transform_indices = @transform_0, window_bounds = array<i64: 16, 32>}, {pipeline_mode = #tpu.pipeline_mode<synchronous>, transform_indices = @transform_1, window_bounds = array<i64: 32, 128>}, {pipeline_mode = #tpu.pipeline_mode<synchronous>, transform_indices = @transform_2, window_bounds = array<i64: 1, 128>}, {pipeline_mode = #tpu.pipeline_mode<synchronous>, transform_indices = @transform_3, window_bounds = array<i64: 128, 128>}, {pipeline_mode = #tpu.pipeline_mode<synchronous>, transform_indices = @transform_4, window_bounds = array<i64: 1, 128>}, {transform_indices = @transform_5, window_bounds = array<i64: 16, 128>}]} {
    %c0 = arith.constant 0 : index
    %c0_0 = arith.constant 0 : index
    %0 = vector.load %arg1[%c0, %c0_0] : memref<16x32xf32, #tpu.memory_space<vmem>>, vector<16x32xf32>
    %1 = arith.truncf %0 : vector<16x32xf32> to vector<16x32xbf16>
    %c0_1 = arith.constant 0 : index
    %c0_2 = arith.constant 0 : index
    %2 = vector.load %arg2[%c0_1, %c0_2] : memref<32x128xbf16, #tpu.memory_space<vmem>>, vector<32x128xbf16>
    %cst = arith.constant dense<0.000000e+00> : vector<16x128xf32>
    %3 = tpu.matmul %1, %2, %cst {dimension_numbers = #tpu.dot_dimension_numbers<[1], [0], [0], [1], [0, 0, 1, 1], [], []>} : vector<16x32xbf16>, vector<32x128xbf16>, vector<16x128xf32> -> vector<16x128xf32>
    %c0_3 = arith.constant 0 : index
    %c0_4 = arith.constant 0 : index
    %4 = vector.load %arg3[%c0_3, %c0_4] : memref<1x128xf32, #tpu.memory_space<vmem>>, vector<1x128xf32>
    %5 = vector.broadcast %4 : vector<1x128xf32> to vector<16x128xf32>
    %6 = arith.addf %3, %5 : vector<16x128xf32>
    %cst_5 = arith.constant 0.000000e+00 : f32
    %7 = vector.broadcast %cst_5 : f32 to vector<16x128xf32>
    %8 = arith.maximumf %6, %7 : vector<16x128xf32>
    %9 = arith.truncf %8 : vector<16x128xf32> to vector<16x128xbf16>
    %c0_6 = arith.constant 0 : index
    %c0_7 = arith.constant 0 : index
    %10 = vector.load %arg4[%c0_6, %c0_7] : memref<128x128xbf16, #tpu.memory_space<vmem>>, vector<128x128xbf16>
    %cst_8 = arith.constant dense<0.000000e+00> : vector<16x128xf32>
    %11 = tpu.matmul %9, %10, %cst_8 {dimension_numbers = #tpu.dot_dimension_numbers<[1], [0], [0], [1], [0, 0, 1, 1], [], []>} : vector<16x128xbf16>, vector<128x128xbf16>, vector<16x128xf32> -> vector<16x128xf32>
    %c0_9 = arith.constant 0 : index
    %c0_10 = arith.constant 0 : index
    %12 = vector.load %arg5[%c0_9, %c0_10] : memref<1x128xf32, #tpu.memory_space<vmem>>, vector<1x128xf32>
    %13 = vector.broadcast %12 : vector<1x128xf32> to vector<16x128xf32>
    %14 = arith.addf %11, %13 : vector<16x128xf32>
    %cst_11 = arith.constant 2.000000e+01 : f32
    %15 = vector.broadcast %cst_11 : f32 to vector<16x128xf32>
    %16 = arith.minimumf %14, %15 : vector<16x128xf32>
    %17 = math.exp %16 : vector<16x128xf32>
    %cst_12 = arith.constant 2.000000e+01 : f32
    %18 = vector.broadcast %cst_12 : f32 to vector<16x128xf32>
    %19 = arith.cmpf ogt, %14, %18 : vector<16x128xf32>
    %20 = math.log1p %17 : vector<16x128xf32>
    %21 = arith.select %19, %14, %20 : vector<16x128xi1>, vector<16x128xf32>
    %c0_13 = arith.constant 0 : index
    %c0_14 = arith.constant 0 : index
    %22 = vector.load %arg6[%c0_13, %c0_14] : memref<16x128xf32, #tpu.memory_space<vmem>>, vector<16x128xf32>
    tpu.vector_store %arg6[%c0_13, %c0_14], %21 {strides = array<i32>} : memref<16x128xf32, #tpu.memory_space<vmem>>, vector<16x128xf32>,
    return
  }
  func.func @transform_0(%arg0: i32) -> (i32, i32) {
    %c0_i32 = arith.constant 0 : i32
    %c0_i32_0 = arith.constant 0 : i32
    return %arg0, %c0_i32 : i32, i32
  }
  func.func @transform_1(%arg0: i32) -> (i32, i32) {
    %c0_i32 = arith.constant 0 : i32
    %c0_i32_0 = arith.constant 0 : i32
    %c0_i32_1 = arith.constant 0 : i32
    return %c0_i32, %c0_i32_0 : i32, i32
  }
  func.func @transform_2(%arg0: i32) -> (i32, i32) {
    %c0_i32 = arith.constant 0 : i32
    %c0_i32_0 = arith.constant 0 : i32
    %c0_i32_1 = arith.constant 0 : i32
    return %c0_i32, %c0_i32_0 : i32, i32
  }
  func.func @transform_3(%arg0: i32) -> (i32, i32) {
    %c0_i32 = arith.constant 0 : i32
    %c0_i32_0 = arith.constant 0 : i32
    %c0_i32_1 = arith.constant 0 : i32
    return %c0_i32, %c0_i32_0 : i32, i32
  }
  func.func @transform_4(%arg0: i32) -> (i32, i32) {
    %c0_i32 = arith.constant 0 : i32
    %c0_i32_0 = arith.constant 0 : i32
    %c0_i32_1 = arith.constant 0 : i32
    return %c0_i32, %c0_i32_0 : i32, i32
  }
  func.func @transform_5(%arg0: i32) -> (i32, i32) {
    %c0_i32 = arith.constant 0 : i32
    %c0_i32_0 = arith.constant 0 : i32
    return %arg0, %c0_i32 : i32, i32
  }
}

module attributes {stable_mosaic.version = 11 : i64} {
  func.func @_fused_slab_kernel(%arg0: i32, %arg1: memref<16x32xf32, #tpu.memory_space<vmem>>, %arg2: memref<32x128xbf16, #tpu.memory_space<vmem>>, %arg3: memref<1x128xf32, #tpu.memory_space<vmem>>, %arg4: memref<128x128xbf16, #tpu.memory_space<vmem>>, %arg5: memref<1x128xf32, #tpu.memory_space<vmem>>, %arg6: memref<16x128xf32, #tpu.memory_space<vmem>>) attributes {dimension_semantics = [#tpu.dimension_semantics<parallel>], iteration_bounds = array<i64: 1>, scalar_prefetch = 0 : i64, scratch_operands = 0 : i64, tpu.core_type = #tpu.core_type<tc>, window_params = [{transform_indices = @transform_0, window_bounds = array<i64: 16, 32>}, {pipeline_mode = #tpu.pipeline_mode<synchronous>, transform_indices = @transform_1, window_bounds = array<i64: 32, 128>}, {pipeline_mode = #tpu.pipeline_mode<synchronous>, transform_indices = @transform_2, window_bounds = array<i64: 1, 128>}, {pipeline_mode = #tpu.pipeline_mode<synchronous>, transform_indices = @transform_3, window_bounds = array<i64: 128, 128>}, {pipeline_mode = #tpu.pipeline_mode<synchronous>, transform_indices = @transform_4, window_bounds = array<i64: 1, 128>}, {transform_indices = @transform_5, window_bounds = array<i64: 16, 128>}]} {
    %c0 = arith.constant 0 : index
    %c0_0 = arith.constant 0 : index
    %0 = vector.load %arg1[%c0, %c0_0] : memref<16x32xf32, #tpu.memory_space<vmem>>, vector<16x32xf32>
    %1 = arith.truncf %0 : vector<16x32xf32> to vector<16x32xbf16>
    %c0_1 = arith.constant 0 : index
    %c0_2 = arith.constant 0 : index
    %2 = vector.load %arg2[%c0_1, %c0_2] : memref<32x128xbf16, #tpu.memory_space<vmem>>, vector<32x128xbf16>
    %cst = arith.constant dense<0.000000e+00> : vector<16x128xf32>
    %3 = tpu.matmul %1, %2, %cst {dimension_numbers = #tpu.dot_dimension_numbers<[1], [0], [0], [1], [0, 0, 1, 1], [], []>} : vector<16x32xbf16>, vector<32x128xbf16>, vector<16x128xf32> -> vector<16x128xf32>
    %c0_3 = arith.constant 0 : index
    %c0_4 = arith.constant 0 : index
    %4 = vector.load %arg3[%c0_3, %c0_4] : memref<1x128xf32, #tpu.memory_space<vmem>>, vector<1x128xf32>
    %5 = vector.broadcast %4 : vector<1x128xf32> to vector<16x128xf32>
    %6 = arith.addf %3, %5 : vector<16x128xf32>
    %cst_5 = arith.constant 0.000000e+00 : f32
    %7 = vector.broadcast %cst_5 : f32 to vector<16x128xf32>
    %8 = arith.maximumf %6, %7 : vector<16x128xf32>
    %9 = arith.truncf %8 : vector<16x128xf32> to vector<16x128xbf16>
    %c0_6 = arith.constant 0 : index
    %c0_7 = arith.constant 0 : index
    %10 = vector.load %arg4[%c0_6, %c0_7] : memref<128x128xbf16, #tpu.memory_space<vmem>>, vector<128x128xbf16>
    %cst_8 = arith.constant dense<0.000000e+00> : vector<16x128xf32>
    %11 = tpu.matmul %9, %10, %cst_8 {dimension_numbers = #tpu.dot_dimension_numbers<[1], [0], [0], [1], [0, 0, 1, 1], [], []>} : vector<16x128xbf16>, vector<128x128xbf16>, vector<16x128xf32> -> vector<16x128xf32>
    %c0_9 = arith.constant 0 : index
    %c0_10 = arith.constant 0 : index
    %12 = vector.load %arg5[%c0_9, %c0_10] : memref<1x128xf32, #tpu.memory_space<vmem>>, vector<1x128xf32>
    %13 = vector.broadcast %12 : vector<1x128xf32> to vector<16x128xf32>
    %14 = arith.addf %11, %13 : vector<16x128xf32>
    %cst_11 = arith.constant 2.000000e+01 : f32
    %15 = vector.broadcast %cst_11 : f32 to vector<16x128xf32>
    %16 = arith.minimumf %14, %15 : vector<16x128xf32>
    %17 = math.exp %16 : vector<16x128xf32>
    %cst_12 = arith.constant 2.000000e+01 : f32
    %18 = vector.broadcast %cst_12 : f32 to vector<16x128xf32>
    %19 = arith.cmpf ogt, %14, %18 : vector<16x128xf32>
    %20 = math.log1p %17 : vector<16x128xf32>
    %21 = arith.select %19, %14, %20 : vector<16x128xi1>, vector<16x128xf32>
    %c0_13 = arith.constant 0 : index
    %c0_14 = arith.constant 0 : index
    %22 = vector.load %arg6[%c0_13, %c0_14] : memref<16x128xf32, #tpu.memory_space<vmem>>, vector<16x128xf32>
    tpu.vector_store %arg6[%c0_13, %c0_14], %21 {strides = array<i32>} : memref<16x128xf32, #tpu.memory_space<vmem>>, vector<16x128xf32>,
    return
  }
  func.func @transform_0(%arg0: i32) -> (i32, i32) {
    %c0_i32 = arith.constant 0 : i32
    %c0_i32_0 = arith.constant 0 : i32
    return %arg0, %c0_i32 : i32, i32
  }
  func.func @transform_1(%arg0: i32) -> (i32, i32) {
    %c0_i32 = arith.constant 0 : i32
    %c0_i32_0 = arith.constant 0 : i32
    %c0_i32_1 = arith.constant 0 : i32
    return %c0_i32, %c0_i32_0 : i32, i32
  }
  func.func @transform_2(%arg0: i32) -> (i32, i32) {
    %c0_i32 = arith.constant 0 : i32
    %c0_i32_0 = arith.constant 0 : i32
    %c0_i32_1 = arith.constant 0 : i32
    return %c0_i32, %c0_i32_0 : i32, i32
  }
  func.func @transform_3(%arg0: i32) -> (i32, i32) {
    %c0_i32 = arith.constant 0 : i32
    %c0_i32_0 = arith.constant 0 : i32
    %c0_i32_1 = arith.constant 0 : i32
    return %c0_i32, %c0_i32_0 : i32, i32
  }
  func.func @transform_4(%arg0: i32) -> (i32, i32) {
    %c0_i32 = arith.constant 0 : i32
    %c0_i32_0 = arith.constant 0 : i32
    %c0_i32_1 = arith.constant 0 : i32
    return %c0_i32, %c0_i32_0 : i32, i32
  }
  func.func @transform_5(%arg0: i32) -> (i32, i32) {
    %c0_i32 = arith.constant 0 : i32
    %c0_i32_0 = arith.constant 0 : i32
    return %arg0, %c0_i32 : i32, i32
  }
}

</mosaic_0001>

<bundles_post_ra>
// kernel: tpu_custom_call.1
= control target key start
LH: loop header
LB: loop body
LE: loop exit
PB: predicated region body
PF: predicated region fallthrough
CT: control target
= control target key end

     0   :  { %10 = vsyncpa [#allocation3], 0  ;;  %s578_s0 = inlined_call_operand.hbm [shape: f32[16,32], index: 0, kind: input, shape index: {}]   ;;  %s579_s1 = inlined_call_operand.hbm [shape: bf16[32,128], index: 1, kind: input, shape index: {}]   ;;  %s580_s2 = inlined_call_operand.vmem [shape: f32[1,128], index: 2, kind: input, shape index: {}]   ;;  %s581_s3 = inlined_call_operand.hbm [shape: bf16[128,128], index: 3, kind: input, shape index: {}]   ;;  %s582_s4 = inlined_call_operand.vmem [shape: f32[1,128], index: 4, kind: input, shape index: {}]   ;;  %s583_s5 = inlined_call_operand.hbm [shape: f32[16,128], index: 5, kind: output, shape index: {}]  }
   0x1   :  { %11 = vsyncpa [#allocation6], 0 }
   0x2   :  { %12 = vsyncpa [#allocation4], 0  ;;  %s472_s18 = smov [#allocation5]   ;;  %s378_s22 = scalar_lea.hbm %s579_s1, 256 }
   0x3   :  { %s30_s19 = sshll.u32 %s472_s18, 4  ;;  %p379_p0 = scmp.ne.s32.totalorder %s579_s1, %s378_s22  ;;  %s31_s19 = int_to_ptr.vmem [resolvable:$true] %s30_s19 }
   0x4   :  { %p382_p1 = scmp.lt.u32.totalorder %s378_s22, %s579_s1 }
   0x6   :  { %p384_p2 = pnand %p382_p1, %p379_p0 }
   0x8   :  { %387 = shalt.err (!%p384_p2)
}
   0x9   :  { %s388_s27 = scalar_lea.vmem %s31_s19, 256  ;;  %p393_p4 = scmp.lt.s32.totalorder %s31_s19, %s31_s19 }
   0xa   :  { %p389_p3 = scmp.ne.s32.totalorder %s31_s19, %s388_s27  ;;  %p394_p5 = scmp.lt.s32.totalorder %s388_s27, %s388_s27 }
   0xc   :  { %p395_p6 = por %p394_p5, %p393_p4 }
   0xe   :  { %p396_p7 = pnand %p395_p6, %p389_p3 }
  0x10   :  { %399 = shalt.err (!%p396_p7)
}
  0x11   :  { %s473_s28 = smov 64   ;;  %s474_s29 = smov 4  }
  0x12   :  { %36 = dma.hbm_to_vmem [thread:$0]  %s579_s1, 256, %s31_s19, [#allocation6], %s473_s28, %s473_s28, %s474_s29  }
  0x13   :  { %s475_s7 = smov [#allocation2]   ;;  %s400_s11 = scalar_lea.hbm %s578_s0, 256 }
  0x14   :  { %s18_s8 = sshll.u32 %s475_s7, 4  ;;  %p401_p8 = scmp.ne.s32.totalorder %s578_s0, %s400_s11  ;;  %s19_s8 = int_to_ptr.vmem [resolvable:$true] %s18_s8 }
  0x15   :  { %p404_p9 = scmp.lt.u32.totalorder %s400_s11, %s578_s0 }
  0x17   :  { %p406_p10 = pnand %p404_p9, %p401_p8 }
  0x19   :  { %409 = shalt.err (!%p406_p10)
}
  0x1a   :  { %s410_s16 = scalar_lea.vmem %s19_s8, 256  ;;  %p415_p12 = scmp.lt.s32.totalorder %s19_s8, %s19_s8 }
  0x1b   :  { %p411_p11 = scmp.ne.s32.totalorder %s19_s8, %s410_s16  ;;  %p416_p13 = scmp.lt.s32.totalorder %s410_s16, %s410_s16 }
  0x1d   :  { %p417_p0 = por %p416_p13, %p415_p12 }
  0x1f   :  { %p418_p1 = pnand %p417_p0, %p411_p11 }
  0x21   :  { %421 = shalt.err (!%p418_p1)
}
  0x22   :  { %s476_s1 = smov 128   ;;  %s477_s17 = smov 8  }
  0x23   :  { %24 = dma.hbm_to_vmem [thread:$0]  %s578_s0, 256, %s19_s8, [#allocation3], %s476_s1, %s476_s1, %s477_s17  }
  0x24   :  { %s478_s20 = smov [#allocation7]   ;;  %s422_s24 = scalar_lea.hbm %s581_s3, 1024 }
  0x25   :  { %s44_s21 = sshll.u32 %s478_s20, 4  ;;  %p423_p2 = scmp.ne.s32.totalorder %s581_s3, %s422_s24  ;;  %s45_s21 = int_to_ptr.vmem [resolvable:$true] %s44_s21 }
  0x26   :  { %p426_p3 = scmp.lt.u32.totalorder %s422_s24, %s581_s3 }
  0x28   :  { %p428_p4 = pnand %p426_p3, %p423_p2 }
  0x2a   :  { %431 = shalt.err (!%p428_p4)
}
  0x2b   :  { %s432_s6 = scalar_lea.vmem %s45_s21, 1024  ;;  %p437_p6 = scmp.lt.s32.totalorder %s45_s21, %s45_s21 }
  0x2c   :  { %p433_p5 = scmp.ne.s32.totalorder %s45_s21, %s432_s6  ;;  %p438_p7 = scmp.lt.s32.totalorder %s432_s6, %s432_s6 }
  0x2e   :  { %p439_p8 = por %p438_p7, %p437_p6 }
  0x30   :  { %p440_p9 = pnand %p439_p8, %p433_p5 }
  0x32   :  { %443 = shalt.err (!%p440_p9)
}
  0x33   :  { %50 = dma.hbm_to_vmem [thread:$0]  %s581_s3, 1024, %s45_s21, [#allocation6], %s473_s28, %s473_s28, %s474_s29  }
  0x34   :  { %466 = dma.done.wait [#allocation3], 256  }
  0x35   :  { %467 = vsyncadd [#allocation3], 4294967040 }
  0x36   :  { %468 = dma.done.wait [#allocation6], 1280  }
  0x37   :  { %469 = vsyncadd [#allocation6], 4294966016  ;;  %v479_v0 = vmov 0.0   ;;  %vm480_vm0 = vmmov 0   ;;  %v360_v1 = vld [vmem:[#allocation5] sm:$0xff]   ;;  %v361_v2 = vld [vmem:[#allocation5 + $0x8] sm:$0xff]  }
  0x38   :  { %322 = vmatprep.subr.bf16.mxu0 %v479_v0  ;;  %326 = vmatprep.mubr.msk.bf16.mxu0 %vm480_vm0, %v479_v0  ;;  %v63_v3 = vld [vmem:[#allocation2] sm:$0xff]  ;;  %v64_v4 = vld [vmem:[#allocation2 + $0x8] sm:$0xff]  ;;  %vm89_vm1 = vcmask 261120   ;;  %v364_v8 = vld [vmem:[#allocation7 + $0x10] sm:$0xff]  }
  0x39   :  { %330 = vmatprep.subr.bf16.mxu1 %v479_v0  ;;  %346 = vmatprep.mubr.msk.bf16.mxu1 %vm480_vm0, %v479_v0  ;;  %v362_v5 = vld [vmem:[#allocation7] sm:$0xff]   ;;  %v65_v6 = vpack.c.bf16 %v64_v4, %v63_v3  ;;  %v363_v7 = vld [vmem:[#allocation7 + $0x8] sm:$0xff]   ;;  %v365_v9 = vld [vmem:[#allocation7 + $0x18] sm:$0xff]  }
  0x3a   :  { %323 = vmatpush3.bf16.msra.mxu0 %v360_v1  ;;  %331 = vmatpush3.bf16.msra.mxu1 %v362_v5  ;;  %v366_v10 = vld [vmem:[#allocation7 + $0x20] sm:$0xff]   ;;  %v367_v11 = vld [vmem:[#allocation7 + $0x28] sm:$0xff]   ;;  %v368_v12 = vld [vmem:[#allocation7 + $0x30] sm:$0xff]  }
  0x3b   :  { %324 = vmatprep.subr.bf16.mxu0 %v479_v0  ;;  %332 = vmatprep.subr.bf16.mxu1 %v479_v0  ;;  %v369_v13 = vld [vmem:[#allocation7 + $0x38] sm:$0xff]   ;;  %v297_v14 = vld [vmem:[%s580_s2] ss:$0 sm:$0xff]  ;;  %s481_s2 = smov [#allocation8]  }
  0x3c   :  { %v301_v24 = vld [vmem:[%s582_s4] ss:$0 sm:$0xff]  ;;  %s284_s4 = sshll.u32 %s481_s2, 4  ;;  %s285_s4 = int_to_ptr.vmem [resolvable:$true] %s284_s4 }
  0x3d   :  { %s444_s9 = scalar_lea.vmem %s285_s4, 256  ;;  %p449_p11 = scmp.lt.s32.totalorder %s285_s4, %s285_s4 }
  0x3e   :  { %325 = vmatpush3.bf16.msra.mxu0 %v361_v2  ;;  %333 = vmatpush3.bf16.msra.mxu1 %v363_v7  ;;  %p445_p10 = scmp.ne.s32.totalorder %s285_s4, %s444_s9  ;;  %p450_p12 = scmp.lt.s32.totalorder %s444_s9, %s444_s9 }
  0x3f   :  { %334 = vmatprep.subr.bf16.mxu1 %v479_v0 }
  0x40   :  { %p451_p13 = por %p450_p12, %p449_p11 }
  0x41   :  { %327 = vmatmul.mubr.msk.bf16.vlgmr.msra.gmra.mrb[0].mxu0 %vm89_vm1, %v65_v6 }
  0x42   :  { %335 = vmatpush3.bf16.msra.mxu1 %v364_v8  ;;  %p452_p0 = pnand %p451_p13, %p445_p10 }
  0x43   :  { %336 = vmatprep.subr.bf16.mxu1 %v479_v0 }
  0x46   :  { %337 = vmatpush3.bf16.msra.mxu1 %v365_v9 }
  0x47   :  { %338 = vmatprep.subr.bf16.mxu1 %v479_v0 }
  0x4a   :  { %339 = vmatpush3.bf16.msra.mxu1 %v366_v10 }
  0x4b   :  { %340 = vmatprep.subr.bf16.mxu1 %v479_v0 }
  0x4e   :  { %341 = vmatpush3.bf16.msra.mxu1 %v367_v11 }
  0x4f   :  { %342 = vmatprep.subr.bf16.mxu1 %v479_v0 }
  0x52   :  { %343 = vmatpush3.bf16.msra.mxu1 %v368_v12 }
  0x53   :  { %344 = vmatprep.subr.bf16.mxu1 %v479_v0 }
  0x56   :  { %345 = vmatpush3.bf16.msra.mxu1 %v369_v13 }
 0x114   :  { %v127_v15 = vpop.f32.mrb[0].mxu0 }
 0x115   :  { %v128_v16 = vadd.f32 %v297_v14, %v127_v15  ;;  %v328_v17 = vpop.f32.mrb[1].mxu0 }
 0x116   :  { %v130_v18 = vpop.f32.mrb[2].mxu0 }
 0x117   :  { %v131_v19 = vadd.f32 %v297_v14, %v130_v18  ;;  %v329_v20 = vpop.f32.mrb[3].mxu0  ;;  %v134_v21 = vmax.f32 %v128_v16, 0.0 }
 0x119   :  { %v135_v22 = vmax.f32 %v131_v19, 0.0 }
 0x11b   :  { %v136_v23 = vpack.c.bf16 %v135_v22, %v134_v21 }
 0x11d   :  { %347 = vmatmul.mubr.bf16.vlgmr.msra.gmra.mrb[0].mxu1 %v136_v23 }
 0x1f0   :  { %v242_v25 = vpop.f32.mrb[0].mxu1 }
 0x1f1   :  { %v243_v26 = vadd.f32 %v301_v24, %v242_v25  ;;  %v348_v27 = vpop.f32.mrb[1].mxu1 }
 0x1f2   :  { %v245_v28 = vpop.f32.mrb[2].mxu1 }
 0x1f3   :  { %v249_v29 = vmin.f32 %v243_v26, 20.0  ;;  %v246_v30 = vadd.f32 %v301_v24, %v245_v28  ;;  %v349_v31 = vpop.f32.mrb[3].mxu1  ;;  %vm255_vm3 = vcmp.gt.f32.partialorder %v243_v26, 20.0 }
 0x1f5   :  { %v251_v32 = vmul.f32 1.442695, %v249_v29  ;;  %v250_v33 = vmin.f32 %v246_v30, 20.0  ;;  %vm256_vm5 = vcmp.gt.f32.partialorder %v246_v30, 20.0 }
 0x1f7   :  { %370 = vpow2.f32 %v251_v32  ;;  %v253_v34 = vmul.f32 1.442695, %v250_v33 }
 0x1f9   :  { %372 = vpow2.f32 %v253_v34 }
 0x201   :  { %v371_v35 = vpop.eup %370 }
 0x202   :  { %v257_v36 = vadd.f32 1.0, %v371_v35  ;;  %v260_v39 = vmul.f32 -0.5, %v371_v35  ;;  %v263_v42 = vand.u32 2147483647, %v371_v35 }
 0x203   :  { %v373_v37 = vpop.eup %372 }
 0x204   :  { %374 = vlog2.f32 %v257_v36  ;;  %v266_v38 = vadd.f32 1.0, %v373_v37  ;;  %v269_v40 = vmul.f32 -0.5, %v373_v37  ;;  %v261_v41 = vadd.f32 1.0, %v260_v39 }
 0x205   :  { %v272_v45 = vand.u32 2147483647, %v373_v37  ;;  %vm264_vm2 = vcmp.lt.f32.partialorder %v263_v42, 0.0004427343 }
 0x206   :  { %376 = vlog2.f32 %v266_v38  ;;  %v270_v43 = vadd.f32 1.0, %v269_v40  ;;  %v262_v47 = vmul.f32 %v371_v35, %v261_v41 }
 0x207   :  { %vm273_vm4 = vcmp.lt.f32.partialorder %v272_v45, 0.0004427343 }
 0x208   :  { %v271_v51 = vmul.f32 %v373_v37, %v270_v43 }
 0x20e   :  { %v375_v44 = vpop.eup %374 }
 0x20f   :  { %v259_v46 = vmul.f32 0.6931472, %v375_v44 }
 0x210   :  { %v377_v48 = vpop.eup %376 }
 0x211   :  { %v265_v49 = vsel %vm264_vm2, %v262_v47, %v259_v46  ;;  %v268_v50 = vmul.f32 0.6931472, %v377_v48 }
 0x212   :  { %v275_v52 = vsel %vm255_vm3, %v243_v26, %v265_v49 }
 0x213   :  { %v274_v53 = vsel %vm273_vm4, %v271_v51, %v268_v50  ;;  %277 = vst [vmem:[#allocation8] sm:$0xff] %v275_v52 }
 0x214   :  { %v276_v54 = vsel %vm256_vm5, %v246_v30, %v274_v53 }
 0x215   :  { %278 = vst [vmem:[#allocation8 + $0x8] sm:$0xff] %v276_v54 }
 0x216   :  { %455 = shalt.err (!%p452_p0)
}
 0x217   :  { %s456_s12 = scalar_lea.hbm %s583_s5, 256 }
 0x218   :  { %p457_p1 = scmp.ne.s32.totalorder %s583_s5, %s456_s12  ;;  %p460_p2 = scmp.lt.u32.totalorder %s456_s12, %s583_s5 }
 0x21a   :  { %p462_p3 = pnand %p460_p2, %p457_p1 }
 0x21c   :  { %465 = shalt.err (!%p462_p3)
}
 0x21d   :  { %290 = dma.vmem_to_hbm [thread:$0]  %s285_s4, 256, %s583_s5, [#allocation4], %s476_s1, %s476_s1, %s477_s17  }
 0x21e   :  { %470 = dma.done.wait [#allocation4], 256  }
 0x21f   :  { %471 = vsyncadd [#allocation4], 4294967040 }
 0x220   :  { %294 = vsyncpa [#allocation3], 1 }
 0x221   :  { %295 = vsyncpa [#allocation6], 1 }
 0x222   :  { %296 = vsyncpa [#allocation4], 1 }

// kernel: tpu_custom_call.1
= control target key start
LH: loop header
LB: loop body
LE: loop exit
PB: predicated region body
PF: predicated region fallthrough
CT: control target
= control target key end

     0   :  { %10 = vsyncpa [#allocation3], 0  ;;  %s578_s0 = inlined_call_operand.hbm [shape: f32[16,32], index: 0, kind: input, shape index: {}]   ;;  %s579_s1 = inlined_call_operand.hbm [shape: bf16[32,128], index: 1, kind: input, shape index: {}]   ;;  %s580_s2 = inlined_call_operand.vmem [shape: f32[1,128], index: 2, kind: input, shape index: {}]   ;;  %s581_s3 = inlined_call_operand.hbm [shape: bf16[128,128], index: 3, kind: input, shape index: {}]   ;;  %s582_s4 = inlined_call_operand.vmem [shape: f32[1,128], index: 4, kind: input, shape index: {}]   ;;  %s583_s5 = inlined_call_operand.hbm [shape: f32[16,128], index: 5, kind: output, shape index: {}]  }
   0x1   :  { %11 = vsyncpa [#allocation6], 0 }
   0x2   :  { %12 = vsyncpa [#allocation4], 0  ;;  %s472_s18 = smov [#allocation5]   ;;  %s378_s22 = scalar_lea.hbm %s579_s1, 256 }
   0x3   :  { %s30_s19 = sshll.u32 %s472_s18, 4  ;;  %p379_p0 = scmp.ne.s32.totalorder %s579_s1, %s378_s22  ;;  %s31_s19 = int_to_ptr.vmem [resolvable:$true] %s30_s19 }
   0x4   :  { %p382_p1 = scmp.lt.u32.totalorder %s378_s22, %s579_s1 }
   0x6   :  { %p384_p2 = pnand %p382_p1, %p379_p0 }
   0x8   :  { %387 = shalt.err (!%p384_p2)
}
   0x9   :  { %s388_s27 = scalar_lea.vmem %s31_s19, 256  ;;  %p393_p4 = scmp.lt.s32.totalorder %s31_s19, %s31_s19 }
   0xa   :  { %p389_p3 = scmp.ne.s32.totalorder %s31_s19, %s388_s27  ;;  %p394_p5 = scmp.lt.s32.totalorder %s388_s27, %s388_s27 }
   0xc   :  { %p395_p6 = por %p394_p5, %p393_p4 }
   0xe   :  { %p396_p7 = pnand %p395_p6, %p389_p3 }
  0x10   :  { %399 = shalt.err (!%p396_p7)
}
  0x11   :  { %s473_s28 = smov 64   ;;  %s474_s29 = smov 4  }
  0x12   :  { %36 = dma.hbm_to_vmem [thread:$0]  %s579_s1, 256, %s31_s19, [#allocation6], %s473_s28, %s473_s28, %s474_s29  }
  0x13   :  { %s475_s7 = smov [#allocation2]   ;;  %s400_s11 = scalar_lea.hbm %s578_s0, 256 }
  0x14   :  { %s18_s8 = sshll.u32 %s475_s7, 4  ;;  %p401_p8 = scmp.ne.s32.totalorder %s578_s0, %s400_s11  ;;  %s19_s8 = int_to_ptr.vmem [resolvable:$true] %s18_s8 }
  0x15   :  { %p404_p9 = scmp.lt.u32.totalorder %s400_s11, %s578_s0 }
  0x17   :  { %p406_p10 = pnand %p404_p9, %p401_p8 }
  0x19   :  { %409 = shalt.err (!%p406_p10)
}
  0x1a   :  { %s410_s16 = scalar_lea.vmem %s19_s8, 256  ;;  %p415_p12 = scmp.lt.s32.totalorder %s19_s8, %s19_s8 }
  0x1b   :  { %p411_p11 = scmp.ne.s32.totalorder %s19_s8, %s410_s16  ;;  %p416_p13 = scmp.lt.s32.totalorder %s410_s16, %s410_s16 }
  0x1d   :  { %p417_p0 = por %p416_p13, %p415_p12 }
  0x1f   :  { %p418_p1 = pnand %p417_p0, %p411_p11 }
  0x21   :  { %421 = shalt.err (!%p418_p1)
}
  0x22   :  { %s476_s1 = smov 128   ;;  %s477_s17 = smov 8  }
  0x23   :  { %24 = dma.hbm_to_vmem [thread:$0]  %s578_s0, 256, %s19_s8, [#allocation3], %s476_s1, %s476_s1, %s477_s17  }
  0x24   :  { %s478_s20 = smov [#allocation7]   ;;  %s422_s24 = scalar_lea.hbm %s581_s3, 1024 }
  0x25   :  { %s44_s21 = sshll.u32 %s478_s20, 4  ;;  %p423_p2 = scmp.ne.s32.totalorder %s581_s3, %s422_s24  ;;  %s45_s21 = int_to_ptr.vmem [resolvable:$true] %s44_s21 }
  0x26   :  { %p426_p3 = scmp.lt.u32.totalorder %s422_s24, %s581_s3 }
  0x28   :  { %p428_p4 = pnand %p426_p3, %p423_p2 }
  0x2a   :  { %431 = shalt.err (!%p428_p4)
}
  0x2b   :  { %s432_s6 = scalar_lea.vmem %s45_s21, 1024  ;;  %p437_p6 = scmp.lt.s32.totalorder %s45_s21, %s45_s21 }
  0x2c   :  { %p433_p5 = scmp.ne.s32.totalorder %s45_s21, %s432_s6  ;;  %p438_p7 = scmp.lt.s32.totalorder %s432_s6, %s432_s6 }
  0x2e   :  { %p439_p8 = por %p438_p7, %p437_p6 }
  0x30   :  { %p440_p9 = pnand %p439_p8, %p433_p5 }
  0x32   :  { %443 = shalt.err (!%p440_p9)
}
  0x33   :  { %50 = dma.hbm_to_vmem [thread:$0]  %s581_s3, 1024, %s45_s21, [#allocation6], %s473_s28, %s473_s28, %s474_s29  }
  0x34   :  { %466 = dma.done.wait [#allocation3], 256  }
  0x35   :  { %467 = vsyncadd [#allocation3], 4294967040 }
  0x36   :  { %468 = dma.done.wait [#allocation6], 1280  }
  0x37   :  { %469 = vsyncadd [#allocation6], 4294966016  ;;  %v479_v0 = vmov 0.0   ;;  %vm480_vm0 = vmmov 0   ;;  %v360_v1 = vld [vmem:[#allocation5] sm:$0xff]   ;;  %v361_v2 = vld [vmem:[#allocation5 + $0x8] sm:$0xff]  }
  0x38   :  { %322 = vmatprep.subr.bf16.mxu0 %v479_v0  ;;  %326 = vmatprep.mubr.msk.bf16.mxu0 %vm480_vm0, %v479_v0  ;;  %v63_v3 = vld [vmem:[#allocation2] sm:$0xff]  ;;  %v64_v4 = vld [vmem:[#allocation2 + $0x8] sm:$0xff]  ;;  %vm89_vm1 = vcmask 261120   ;;  %v364_v8 = vld [vmem:[#allocation7 + $0x10] sm:$0xff]  }
  0x39   :  { %330 = vmatprep.subr.bf16.mxu1 %v479_v0  ;;  %346 = vmatprep.mubr.msk.bf16.mxu1 %vm480_vm0, %v479_v0  ;;  %v362_v5 = vld [vmem:[#allocation7] sm:$0xff]   ;;  %v65_v6 = vpack.c.bf16 %v64_v4, %v63_v3  ;;  %v363_v7 = vld [vmem:[#allocation7 + $0x8] sm:$0xff]   ;;  %v365_v9 = vld [vmem:[#allocation7 + $0x18] sm:$0xff]  }
  0x3a   :  { %323 = vmatpush3.bf16.msra.mxu0 %v360_v1  ;;  %331 = vmatpush3.bf16.msra.mxu1 %v362_v5  ;;  %v366_v10 = vld [vmem:[#allocation7 + $0x20] sm:$0xff]   ;;  %v367_v11 = vld [vmem:[#allocation7 + $0x28] sm:$0xff]   ;;  %v368_v12 = vld [vmem:[#allocation7 + $0x30] sm:$0xff]  }
  0x3b   :  { %324 = vmatprep.subr.bf16.mxu0 %v479_v0  ;;  %332 = vmatprep.subr.bf16.mxu1 %v479_v0  ;;  %v369_v13 = vld [vmem:[#allocation7 + $0x38] sm:$0xff]   ;;  %v297_v14 = vld [vmem:[%s580_s2] ss:$0 sm:$0xff]  ;;  %s481_s2 = smov [#allocation8]  }
  0x3c   :  { %v301_v24 = vld [vmem:[%s582_s4] ss:$0 sm:$0xff]  ;;  %s284_s4 = sshll.u32 %s481_s2, 4  ;;  %s285_s4 = int_to_ptr.vmem [resolvable:$true] %s284_s4 }
  0x3d   :  { %s444_s9 = scalar_lea.vmem %s285_s4, 256  ;;  %p449_p11 = scmp.lt.s32.totalorder %s285_s4, %s285_s4 }
  0x3e   :  { %325 = vmatpush3.bf16.msra.mxu0 %v361_v2  ;;  %333 = vmatpush3.bf16.msra.mxu1 %v363_v7  ;;  %p445_p10 = scmp.ne.s32.totalorder %s285_s4, %s444_s9  ;;  %p450_p12 = scmp.lt.s32.totalorder %s444_s9, %s444_s9 }
  0x3f   :  { %334 = vmatprep.subr.bf16.mxu1 %v479_v0 }
  0x40   :  { %p451_p13 = por %p450_p12, %p449_p11 }
  0x41   :  { %327 = vmatmul.mubr.msk.bf16.vlgmr.msra.gmra.mrb[0].mxu0 %vm89_vm1, %v65_v6 }
  0x42   :  { %335 = vmatpush3.bf16.msra.mxu1 %v364_v8  ;;  %p452_p0 = pnand %p451_p13, %p445_p10 }
  0x43   :  { %336 = vmatprep.subr.bf16.mxu1 %v479_v0 }
  0x46   :  { %337 = vmatpush3.bf16.msra.mxu1 %v365_v9 }
  0x47   :  { %338 = vmatprep.subr.bf16.mxu1 %v479_v0 }
  0x4a   :  { %339 = vmatpush3.bf16.msra.mxu1 %v366_v10 }
  0x4b   :  { %340 = vmatprep.subr.bf16.mxu1 %v479_v0 }
  0x4e   :  { %341 = vmatpush3.bf16.msra.mxu1 %v367_v11 }
  0x4f   :  { %342 = vmatprep.subr.bf16.mxu1 %v479_v0 }
  0x52   :  { %343 = vmatpush3.bf16.msra.mxu1 %v368_v12 }
  0x53   :  { %344 = vmatprep.subr.bf16.mxu1 %v479_v0 }
  0x56   :  { %345 = vmatpush3.bf16.msra.mxu1 %v369_v13 }
 0x114   :  { %v127_v15 = vpop.f32.mrb[0].mxu0 }
 0x115   :  { %v128_v16 = vadd.f32 %v297_v14, %v127_v15  ;;  %v328_v17 = vpop.f32.mrb[1].mxu0 }
 0x116   :  { %v130_v18 = vpop.f32.mrb[2].mxu0 }
 0x117   :  { %v131_v19 = vadd.f32 %v297_v14, %v130_v18  ;;  %v329_v20 = vpop.f32.mrb[3].mxu0  ;;  %v134_v21 = vmax.f32 %v128_v16, 0.0 }
 0x119   :  { %v135_v22 = vmax.f32 %v131_v19, 0.0 }
 0x11b   :  { %v136_v23 = vpack.c.bf16 %v135_v22, %v134_v21 }
 0x11d   :  { %347 = vmatmul.mubr.bf16.vlgmr.msra.gmra.mrb[0].mxu1 %v136_v23 }
 0x1f0   :  { %v242_v25 = vpop.f32.mrb[0].mxu1 }
 0x1f1   :  { %v243_v26 = vadd.f32 %v301_v24, %v242_v25  ;;  %v348_v27 = vpop.f32.mrb[1].mxu1 }
 0x1f2   :  { %v245_v28 = vpop.f32.mrb[2].mxu1 }
 0x1f3   :  { %v249_v29 = vmin.f32 %v243_v26, 20.0  ;;  %v246_v30 = vadd.f32 %v301_v24, %v245_v28  ;;  %v349_v31 = vpop.f32.mrb[3].mxu1  ;;  %vm255_vm3 = vcmp.gt.f32.partialorder %v243_v26, 20.0 }
 0x1f5   :  { %v251_v32 = vmul.f32 1.442695, %v249_v29  ;;  %v250_v33 = vmin.f32 %v246_v30, 20.0  ;;  %vm256_vm5 = vcmp.gt.f32.partialorder %v246_v30, 20.0 }
 0x1f7   :  { %370 = vpow2.f32 %v251_v32  ;;  %v253_v34 = vmul.f32 1.442695, %v250_v33 }
 0x1f9   :  { %372 = vpow2.f32 %v253_v34 }
 0x201   :  { %v371_v35 = vpop.eup %370 }
 0x202   :  { %v257_v36 = vadd.f32 1.0, %v371_v35  ;;  %v260_v39 = vmul.f32 -0.5, %v371_v35  ;;  %v263_v42 = vand.u32 2147483647, %v371_v35 }
 0x203   :  { %v373_v37 = vpop.eup %372 }
 0x204   :  { %374 = vlog2.f32 %v257_v36  ;;  %v266_v38 = vadd.f32 1.0, %v373_v37  ;;  %v269_v40 = vmul.f32 -0.5, %v373_v37  ;;  %v261_v41 = vadd.f32 1.0, %v260_v39 }
 0x205   :  { %v272_v45 = vand.u32 2147483647, %v373_v37  ;;  %vm264_vm2 = vcmp.lt.f32.partialorder %v263_v42, 0.0004427343 }
 0x206   :  { %376 = vlog2.f32 %v266_v38  ;;  %v270_v43 = vadd.f32 1.0, %v269_v40  ;;  %v262_v47 = vmul.f32 %v371_v35, %v261_v41 }
 0x207   :  { %vm273_vm4 = vcmp.lt.f32.partialorder %v272_v45, 0.0004427343 }
 0x208   :  { %v271_v51 = vmul.f32 %v373_v37, %v270_v43 }
 0x20e   :  { %v375_v44 = vpop.eup %374 }
 0x20f   :  { %v259_v46 = vmul.f32 0.6931472, %v375_v44 }
 0x210   :  { %v377_v48 = vpop.eup %376 }
 0x211   :  { %v265_v49 = vsel %vm264_vm2, %v262_v47, %v259_v46  ;;  %v268_v50 = vmul.f32 0.6931472, %v377_v48 }
 0x212   :  { %v275_v52 = vsel %vm255_vm3, %v243_v26, %v265_v49 }
 0x213   :  { %v274_v53 = vsel %vm273_vm4, %v271_v51, %v268_v50  ;;  %277 = vst [vmem:[#allocation8] sm:$0xff] %v275_v52 }
 0x214   :  { %v276_v54 = vsel %vm256_vm5, %v246_v30, %v274_v53 }
 0x215   :  { %278 = vst [vmem:[#allocation8 + $0x8] sm:$0xff] %v276_v54 }
 0x216   :  { %455 = shalt.err (!%p452_p0)
}
 0x217   :  { %s456_s12 = scalar_lea.hbm %s583_s5, 256 }
 0x218   :  { %p457_p1 = scmp.ne.s32.totalorder %s583_s5, %s456_s12  ;;  %p460_p2 = scmp.lt.u32.totalorder %s456_s12, %s583_s5 }
 0x21a   :  { %p462_p3 = pnand %p460_p2, %p457_p1 }
 0x21c   :  { %465 = shalt.err (!%p462_p3)
}
 0x21d   :  { %290 = dma.vmem_to_hbm [thread:$0]  %s285_s4, 256, %s583_s5, [#allocation4], %s476_s1, %s476_s1, %s477_s17  }
 0x21e   :  { %470 = dma.done.wait [#allocation4], 256  }
 0x21f   :  { %471 = vsyncadd [#allocation4], 4294967040 }
 0x220   :  { %294 = vsyncpa [#allocation3], 1 }
 0x221   :  { %295 = vsyncpa [#allocation6], 1 }
 0x222   :  { %296 = vsyncpa [#allocation4], 1 }

</bundles_post_ra>
